<compile_context>
chip_gen: v6e
topology: v6e:2x2x1
jax: 0.10.0
libtpu: 0.0.40
codegen_flags: <defaults>
</compile_context>

<pallas_src>
import jax
import jax.numpy as jnp
from jax.experimental import pallas as pl
from jax.experimental.pallas import tpu as pltpu

IN_FEATURES = 5
OUT_FEATURES = 3
GROUP = 25                     # rows folded into the lane dim: (B,5) -> (B/25,125)
KD = GROUP * IN_FEATURES       # 125  lane-dense contraction dim
ND = GROUP * OUT_FEATURES      # 75   lane-dense output dim

TBG_MAX = 8192                 # grouped rows per tile (= 204800 original rows)
MIN_GRID_STEPS = 8             # keep >=8 grid steps (v7x megacore + pipeline ramp)
SMALL_B_ROWS = 2048            # below this, skip pallas_call entirely


def _round_up(x, m):
    return ((x + m - 1) // m) * m


def _linear_kernel(x_ref, w_ref, b_ref, o_ref):
    # x_ref: (TBG, 125)  grouped rows, lane-dense
    # w_ref: (125, 75)   block-diagonal kron(I_25, W^T), VMEM-resident (const idx map)
    # b_ref: (1, 75)     bias tiled 25x
    # o_ref: (TBG, 75)
    acc = jnp.dot(
        x_ref[...],
        w_ref[...],
        preferred_element_type=jnp.float32,
        precision=jax.lax.Precision.HIGHEST,   # true-f32 MXU passes; hidden under DMA
    )
    o_ref[...] = (acc + b_ref[...]).astype(o_ref.dtype)


def linear_pallas(x, weight, bias):
    """x: (..., IN) float32; weight: (OUT, IN); bias: (OUT,) -> (..., OUT)."""
    orig_shape = x.shape
    x2d = x.reshape(-1, IN_FEATURES)          # (B, IN)
    B = x2d.shape[0]

    # --- Small-batch fast path (covers the reference x = ones(5) case). ---
    if B < SMALL_B_ROWS:
        out = x2d @ weight.T + bias
        return out.reshape(*orig_shape[:-1], OUT_FEATURES)

    # --- Lane-dense kernel path. ---
    B_main = (B // GROUP) * GROUP             # rows handled by the kernel
    BG = B_main // GROUP                      # grouped rows

    # Tile in grouped rows: big enough to amortize per-step overhead, small
    # enough that the grid has >= MIN_GRID_STEPS steps for megacore sharding.
    TBG = min(TBG_MAX, _round_up(pl.cdiv(BG, MIN_GRID_STEPS), 8))
    grid = (pl.cdiv(BG, TBG),)                # last block may be partial -> OOB-masked

    # Free view: row-major (B_main, 5) == (BG, 125).  No copy when B_main == B.
    x_main = x2d if B_main == B else x2d[:B_main]
    xg = x_main.reshape(BG, KD)

    # Block-diagonal weight (125, 75) = kron(I_25, W^T); bias tiled to (1, 75).
    w_bd = jnp.kron(jnp.eye(GROUP, dtype=weight.dtype), weight.T)
    b_bd = jnp.tile(bias, GROUP).reshape(1, ND)

    out_g = pl.pallas_call(
        _linear_kernel,
        out_shape=jax.ShapeDtypeStruct((BG, ND), x2d.dtype),
        grid_spec=pltpu.PrefetchScalarGridSpec(
            num_scalar_prefetch=0,
            grid=grid,
            in_specs=[
                pl.BlockSpec((TBG, KD), lambda i: (i, 0)),
                # weight / bias: constant index_map -> resident across the grid
                pl.BlockSpec((KD, ND), lambda i: (0, 0)),
                pl.BlockSpec((1, ND), lambda i: (0, 0)),
            ],
            out_specs=pl.BlockSpec((TBG, ND), lambda i: (i, 0)),
        ),
        compiler_params=pltpu.CompilerParams(
            dimension_semantics=("parallel",),        # megacore sharding on v7x
            vmem_limit_bytes=32 * 1024 * 1024,        # explicit budget (v5e/v7x safe)
        ),
    )(xg, w_bd, b_bd)

    out_main = out_g.reshape(B_main, OUT_FEATURES)    # free reshape back to (B_main, 3)

    if B_main == B:
        out = out_main
    else:
        # Ragged remainder (< 25 rows): tiny fused XLA dot, then stitch.
        # TODO(synk): the concatenate re-materializes the output; only hit when
        # B % 25 != 0 (never in the benchmark-relevant divisible case).
        tail = x2d[B_main:] @ weight.T + bias
        out = jnp.concatenate([out_main, tail], axis=0)

    return out.reshape(*orig_shape[:-1], OUT_FEATURES)


def init_params(key):
    # Mimic torch.nn.Linear default init: U(-1/sqrt(fan_in), 1/sqrt(fan_in))
    kw, kb = jax.random.split(key)
    bound = 1.0 / jnp.sqrt(float(IN_FEATURES))
    weight = jax.random.uniform(
        kw, (OUT_FEATURES, IN_FEATURES), jnp.float32, -bound, bound
    )
    bias = jax.random.uniform(kb, (OUT_FEATURES,), jnp.float32, -bound, bound)
    return weight, bias


if __name__ == "__main__":
    key = jax.random.PRNGKey(0)
    kparam, kx1, kx2 = jax.random.split(key, 3)
    weight, bias = init_params(kparam)

    # Case 1: the reference module's input, x = torch.ones(5)  (fast path).
    x = jnp.ones((IN_FEATURES,), dtype=jnp.float32)
    y = jax.block_until_ready(linear_pallas(x, weight, bias))
    y_ref = x @ weight.T + bias
    assert y.shape == (OUT_FEATURES,)
    assert jnp.allclose(y, y_ref, atol=1e-4, rtol=1e-4)

    # Case 2: batch divisible by 25 -> fully copy-free kernel path.
    #         BG = 400 grouped rows, grid of 8 tiles, last tile partially OOB.
    xb = jax.random.normal(kx1, (10000, IN_FEATURES), dtype=jnp.float32)
    yb = jax.block_until_ready(linear_pallas(xb, weight, bias))
    yb_ref = xb @ weight.T + bias
    assert yb.shape == (10000, OUT_FEATURES)
    assert jnp.allclose(yb, yb_ref, atol=1e-4, rtol=1e-4)

    # Case 3: ragged batch (kernel prefix + XLA tail of 7 rows).
    xc = jax.random.normal(kx2, (5007, IN_FEATURES), dtype=jnp.float32)
    yc = jax.block_until_ready(linear_pallas(xc, weight, bias))
    yc_ref = xc @ weight.T + bias
    assert yc.shape == (5007, OUT_FEATURES)
    assert jnp.allclose(yc, yc_ref, atol=1e-4, rtol=1e-4)

    print("KERNEL_OK")
</pallas_src>

<mosaic_0001>
module attributes {stable_mosaic.version = 11 : i64} {
  func.func @_linear_kernel(%arg0: i32, %arg1: memref<56x125xf32, #tpu.memory_space<vmem>>, %arg2: memref<125x75xf32, #tpu.memory_space<vmem>>, %arg3: memref<1x75xf32, #tpu.memory_space<vmem>>, %arg4: memref<56x75xf32, #tpu.memory_space<vmem>>) attributes {dimension_semantics = [#tpu.dimension_semantics<parallel>], iteration_bounds = array<i64: 8>, scalar_prefetch = 0 : i64, scratch_operands = 0 : i64, tpu.core_type = #tpu.core_type<tc>, window_params = [{transform_indices = @transform_0, window_bounds = array<i64: 56, 125>}, {pipeline_mode = #tpu.pipeline_mode<synchronous>, transform_indices = @transform_1, window_bounds = array<i64: 125, 75>}, {pipeline_mode = #tpu.pipeline_mode<synchronous>, transform_indices = @transform_2, window_bounds = array<i64: 1, 75>}, {transform_indices = @transform_3, window_bounds = array<i64: 56, 75>}]} {
    %c0 = arith.constant 0 : index
    %c0_0 = arith.constant 0 : index
    %0 = vector.load %arg1[%c0, %c0_0] : memref<56x125xf32, #tpu.memory_space<vmem>>, vector<56x125xf32>
    %c0_1 = arith.constant 0 : index
    %c0_2 = arith.constant 0 : index
    %1 = vector.load %arg2[%c0_1, %c0_2] : memref<125x75xf32, #tpu.memory_space<vmem>>, vector<125x75xf32>
    %cst = arith.constant dense<0.000000e+00> : vector<56x75xf32>
    %2 = tpu.matmul %0, %1, %cst {dimension_numbers = #tpu.dot_dimension_numbers<[1], [0], [0], [1], [0, 0, 1, 1], [], []>, precision = #tpu.contract_precision<fp32>} : vector<56x125xf32>, vector<125x75xf32>, vector<56x75xf32> -> vector<56x75xf32>
    %c0_3 = arith.constant 0 : index
    %c0_4 = arith.constant 0 : index
    %3 = vector.load %arg3[%c0_3, %c0_4] : memref<1x75xf32, #tpu.memory_space<vmem>>, vector<1x75xf32>
    %4 = vector.broadcast %3 : vector<1x75xf32> to vector<56x75xf32>
    %5 = arith.addf %2, %4 : vector<56x75xf32>
    %c0_5 = arith.constant 0 : index
    %c0_6 = arith.constant 0 : index
    %6 = vector.load %arg4[%c0_5, %c0_6] : memref<56x75xf32, #tpu.memory_space<vmem>>, vector<56x75xf32>
    tpu.vector_store %arg4[%c0_5, %c0_6], %5 {strides = array<i32>} : memref<56x75xf32, #tpu.memory_space<vmem>>, vector<56x75xf32>,
    return
  }
  func.func @transform_0(%arg0: i32) -> (i32, i32) {
    %c0_i32 = arith.constant 0 : i32
    %c0_i32_0 = arith.constant 0 : i32
    return %arg0, %c0_i32 : i32, i32
  }
  func.func @transform_1(%arg0: i32) -> (i32, i32) {
    %c0_i32 = arith.constant 0 : i32
    %c0_i32_0 = arith.constant 0 : i32
    %c0_i32_1 = arith.constant 0 : i32
    return %c0_i32, %c0_i32_0 : i32, i32
  }
  func.func @transform_2(%arg0: i32) -> (i32, i32) {
    %c0_i32 = arith.constant 0 : i32
    %c0_i32_0 = arith.constant 0 : i32
    %c0_i32_1 = arith.constant 0 : i32
    return %c0_i32, %c0_i32_0 : i32, i32
  }
  func.func @transform_3(%arg0: i32) -> (i32, i32) {
    %c0_i32 = arith.constant 0 : i32
    %c0_i32_0 = arith.constant 0 : i32
    return %arg0, %c0_i32 : i32, i32
  }
}

</mosaic_0001>

<bundles_post_ra>
// kernel: tpu_custom_call.1
= control target key start
LH: loop header
LB: loop body
LE: loop exit
PB: predicated region body
PF: predicated region fallthrough
CT: control target
= control target key end

     0   :  { %8 = vsyncpa [#allocation3], 0  ;;  %s2941_s0 = inlined_call_operand.hbm [shape: f32[400,125], index: 0, kind: input, shape index: {}]   ;;  %s2942_s1 = inlined_call_operand.vmem [shape: f32[125,75], index: 1, kind: input, shape index: {}]   ;;  %s2943_s2 = inlined_call_operand.vmem [shape: f32[1,75], index: 2, kind: input, shape index: {}]   ;;  %s2944_s3 = inlined_call_operand.vmem [shape: f32[400,75], index: 3, kind: output, shape index: {}]  }
   0x1   :  { %10 = vsyncpa [#allocation3 + $0x1], 0  ;;  %s2156_s12 = smov 0   ;;  %s2158_s13 = smov 0  }
   0x2   :  { %s2160_s14 = smov 0   ;;  %s2162_s15 = smov 0  }
   0x3 LB: > { %s2175_s16 = sadd.s32 4294967295, %s2097_s15   ;;  %s2178_s17 = sadd.s32 1, %s2097_s15   ;;  %s2097_s15 = sphi %s2162_s15, %s2971_s15   ;;  %s2093_s14 = sphi %s2160_s14, %s2970_s14   ;;  %s2089_s13 = sphi %s2158_s13, %s2969_s13   ;;  %s2085_s12 = sphi %s2156_s12, %s2968_s12  }
   0x4   : > { %s20_s18 = ssub.s32 %s2097_s15, %s2178_s17  ;;  %s23_s19 = sadd.s32 1, %s2093_s14 }
   0x5   : > { %p21_p0 = scmp.eq.s32.totalorder %s20_s18, 0  ;;  %p30_p1 = scmp.ne.s32.totalorder %s2093_s14, %s2089_s13 }
   0x6   : > { %p31_p2 = scmp.eq.s32.totalorder %s2097_s15, 0  ;;  %p36_p3 = scmp.ne.s32.totalorder %s2089_s13, %s2085_s12 }
   0x7   : > { %s2188_s20 = scalar_select %p21_p0, %s2093_s14, %s23_s19  }
   0x8   : > { %p32_p4 = por %p31_p2, %p30_p1  ;;  %p37_p5 = scmp.eq.s32.totalorder %s2175_s16, 0 }
   0x9   : > { %p102_p6 = scmp.eq.s32.totalorder %s2175_s16, 7  ;;  %p1419_p9 = scmp.ge.s32.totalorder %s2097_s15, 8 }
   0xa   : > { %p2192_p7 = por %p37_p5, %p36_p3 }
   0xb   : > { %p2196_p8 = por %p102_p6, %p30_p1  ;;  %130 = sbr.rel (%p1419_p9) target bundleno = 50 (0x32), region = 24 }
  0x10   : > { %133 = sbr.rel (!%p32_p4) target bundleno = 50 (0x32), region = 28  ;;  %s134_s23 = sand.u32 (%p32_p4), 1, %s2093_s14  }
  0x11   : > { %s139_s24 = smul.u32 (%p32_p4), 7, %s2097_s15  ;;  %s2206_s29 = scalar_lea.sflag (%p32_p4), [#allocation3], %s134_s23 }
  0x12   : > { %s1897_s25 = smul.u32 (%p32_p4), 56, %s134_s23 }
  0x13   : > { %s140_s26 = ssub.s32 (%p32_p4), 50, %s139_s24 }
  0x14   : > { %p141_p10 = scmp.lt.s32.totalorder (%p32_p4), %s140_s26, 7  ;;  %s138_s30 = scalar_lea.vmem (%p32_p4), [#allocation2], %s1897_s25 }
  0x16   : > { %s2973_s26 = smov (!%p141_p10, %s140_s26), 7 }
  0x17   : > { %s2203_s27 = sshll.u32 %s2973_s26, 7 }
  0x18   : > { %s145_s28 = ssub.s32 896, %s2203_s27 }
  0x19   : > { %146 = vsyncadd %s2206_s29, %s145_s28  ;;  %p1421_p11 = scmp.ne.s32.totalorder %s2203_s27, 0  ;;  %s1439_s4 = smul.u32 896, %s2097_s15 }
  0x1a   : > { %s151_s5 = sshll.u32 %s138_s30, 4  ;;  %s2009_s12 = scalar_lea.hbm %s2941_s0, 6400  ;;  %s2216_s5 = int_to_ptr.vmem [resolvable:$true] %s151_s5 }
  0x1b   : > { %s2214_s8 = scalar_lea.hbm %s2941_s0, %s1439_s4 }
  0x1c   : > { %s2005_s9 = scalar_lea.hbm %s2214_s8, %s2203_s27  ;;  %p2010_p1 = scmp.lt.s32.totalorder %s2214_s8, %s2941_s0 }
  0x1d   : > { %p2006_p12 = scmp.ne.s32.totalorder %s2214_s8, %s2005_s9  ;;  %p2011_p2 = scmp.lt.s32.totalorder %s2009_s12, %s2005_s9 }
  0x1f   : > { %p2007_p13 = pnand %p2006_p12, %p1421_p11  ;;  %p2012_p3 = por %p2011_p2, %p2010_p1 }
  0x21   : > { %p2008_p0 = pneg %p2007_p13 }
  0x23   : > { %p2013_p4 = pnand %p2012_p3, %p2008_p0 }
  0x25   : > { %2016 = shalt.err (!%p2013_p4)
}
  0x26   : > { %s2017_s23 = scalar_lea.vmem %s2216_s5, %s2203_s27  ;;  %s2131_s24 = smov [#allocation2]  }
  0x27   : > { %p2018_p5 = scmp.ne.s32.totalorder %s2216_s5, %s2017_s23  ;;  %s2021_s25 = sshll.u32 %s2131_s24, 4  ;;  %s2022_s25 = int_to_ptr.vmem [resolvable:$false] %s2021_s25 }
  0x28   : > { %s2023_s26 = scalar_lea.vmem %s2022_s25, 1792  ;;  %p2024_p10 = scmp.lt.s32.totalorder %s2216_s5, %s2022_s25 }
  0x29   : > { %p2019_p6 = pnand %p2018_p5, %p1421_p11  ;;  %p2025_p12 = scmp.lt.s32.totalorder %s2023_s26, %s2017_s23 }
  0x2b   : > { %p2020_p9 = pneg %p2019_p6  ;;  %p2026_p13 = por %p2025_p12, %p2024_p10 }
  0x2d   : > { %p2027_p1 = pnand %p2026_p13, %p2020_p9 }
  0x2f   : > { %2030 = shalt.err (!%p2027_p1)
}
  0x30   : > { %s2132_s28 = smov 128   ;;  %s2133_s30 = smov 8  }
  0x31   : > { %157 = dma.hbm_to_vmem [thread:$0]  (%p1421_p11), %s2214_s8, %s2203_s27, %s2216_s5, %s2206_s29, %s2132_s28, %s2132_s28, %s2133_s30  }
  0x32 PF: > { %p1425_p0 = scmp.ge.s32.totalorder %s2097_s15, 1  ;;  %p159_p2 = scmp.lt.s32.totalorder %s2097_s15, 9 }
  0x34   : > { %p160_p3 = pnand %p1425_p0, %p159_p2 }
  0x35   : > { %s165_s4 = sand.u32 (!%p160_p3), 1, %s2089_s13  }
  0x36   : > { %163 = sbr.rel (%p160_p3) target bundleno = 468 (0x1d4), region = 32  ;;  %s166_s7 = scalar_lea.sflag (!%p160_p3), [#allocation3], %s165_s4 }
  0x37   : > { %s2245_s6 = smul.u32 (!%p160_p3), 56, %s165_s4 }
  0x39   : > { %s2248_s9 = scalar_lea.vmem (!%p160_p3), [#allocation2], %s2245_s6 }
  0x3b   : > { %2080 = dma.done.wait (%p2192_p7), %s166_s7, 896  }
  0x3c   : > { %2082 = vsyncadd (%p2192_p7), %s166_s7, 4294966400  ;;  %v2134_v0 = vmov 0.0   ;;  %vm2135_vm0 = vmmov 0   ;;  %vm253_vm1 = vcmask 1044480   ;;  %v223_v1 = vld [vmem:[%s2942_s1 + $0x78] sm:$0x1f] }
  0x3d   : > { %1579 = vmatprep.subr.mxu0 %v2134_v0  ;;  %1632 = vmatprep.subr.mxu1 %v2134_v0  ;;  %v222_v2 = vld [vmem:[%s2942_s1 + $0x70] sm:$0xff]  ;;  %v221_v3 = vld [vmem:[%s2942_s1 + $0x68] sm:$0xff]  ;;  %v255_v4 = vsel %vm253_vm1, %v223_v1, 0  ;;  %v220_v7 = vld [vmem:[%s2942_s1 + $0x60] sm:$0xff]  ;;  %vm231_vm2 = vcmask 1022976   ;;  %vm1156_vm3 = vcmask 613376  }
  0x3e   : > { %1611 = vmatprep.mubr.msk.f32.mxu0 %vm2135_vm0, %v2134_v0  ;;  %1664 = vmatprep.mubr.msk.f32.mxu1 %vm2135_vm0, %v2134_v0  ;;  %v2269_v5 = vand.u32 4294901760, %v222_v2  ;;  %v2271_v6 = vand.u32 4294901760, %v221_v3  ;;  %v219_v8 = vld [vmem:[%s2942_s1 + $0x58] sm:$0xff]  ;;  %v218_v9 = vld [vmem:[%s2942_s1 + $0x50] sm:$0xff]  ;;  %v2282_v10 = vand.u32 4294901760, %v255_v4  ;;  %v2284_v11 = vand.u32 4294901760, %v220_v7 }
  0x3f   : > { %v2286_v12 = vand.u32 4294901760, %v219_v8  ;;  %v2288_v13 = vand.u32 4294901760, %v218_v9  ;;  %v217_v14 = vld [vmem:[%s2942_s1 + $0x48] sm:$0xff]  ;;  %v216_v17 = vld [vmem:[%s2942_s1 + $0x40] sm:$0xff]  ;;  %v215_v21 = vld [vmem:[%s2942_s1 + $0x38] sm:$0xff]  ;;  %s2862_s26 = scalar_lea.vmem [#allocation4], %s2245_s6  }
  0x40   : > { %v2294_v15 = vsub.f32 %v222_v2, %v2269_v5  ;;  %v2297_v16 = vsub.f32 %v221_v3, %v2271_v6  ;;  %1580 = vmatpush3.msra.mxu0 %v2282_v10  ;;  %v2304_v18 = vsub.f32 %v255_v4, %v2282_v10  ;;  %v2306_v19 = vand.u32 4294901760, %v217_v14  ;;  %v214_v29 = vld [vmem:[%s2942_s1 + $0x30] sm:$0xff]  ;;  %v213_v38 = vld [vmem:[%s2942_s1 + $0x28] sm:$0xff]  ;;  %v212_v42 = vld [vmem:[%s2942_s1 + $0x20] sm:$0xff]  ;;  %s1171_s6 = smul.u32 (%p2196_p8), 7, %s2175_s16 }
  0x41   : > { %v2309_v20 = vsub.f32 %v220_v7, %v2284_v11  ;;  %v2315_v22 = vsub.f32 %v219_v8, %v2286_v12  ;;  %1581 = vmatprep.subr.mxu0 %v2134_v0  ;;  %v2321_v25 = vsub.f32 %v218_v9, %v2288_v13  ;;  %v2325_v27 = vand.u32 4294901760, %v216_v17  ;;  %v201_v45 = vld [vmem:[%s2248_s9] sm:$0xff]  ;;  %v210_v59 = vld [vmem:[%s2942_s1 + $0x10] sm:$0xff]  ;;  %v209_v2 = vld [vmem:[%s2942_s1 + $0x8] sm:$0xff]  ;;  %s1440_s28 = smul.u32 (%p2196_p8), 56, %s2175_s16 }
  0x42   : > { %v418_v23 = vand.u32 4294901760, %v2294_v15  ;;  %v425_v24 = vand.u32 4294901760, %v2297_v16  ;;  %1582 = vmatpush3.msra.mxu0 %v2269_v5  ;;  %v411_v26 = vand.u32 4294901760, %v2304_v18  ;;  %v2335_v31 = vand.u32 4294901760, %v215_v21  ;;  %v211_v50 = vld [vmem:[%s2942_s1 + $0x18] sm:$0xff]  ;;  %v202_v9 = vld [vmem:[%s2248_s9 + $0x8] sm:$0xff] }
  0x43   : > { %v432_v28 = vand.u32 4294901760, %v2309_v20  ;;  %1583 = vmatprep.subr.mxu0 %v2134_v0  ;;  %v439_v34 = vand.u32 4294901760, %v2315_v22  ;;  %v2346_v35 = vsub.f32 %v217_v14, %v2306_v19  ;;  %v2349_v36 = vand.u32 4294901760, %v214_v29  ;;  %s1172_s30 = ssub.s32 (%p2196_p8), 50, %s1171_s6  ;;  %s2889_s15 = scalar_lea.vmem (%p2196_p8), %s2944_s3, %s1440_s28  }
  0x44   : > { %v419_v30 = vsub.f32 %v2294_v15, %v418_v23  ;;  %1584 = vmatpush3.msra.mxu0 %v2271_v6  ;;  %v412_v32 = vsub.f32 %v2304_v18, %v411_v26  ;;  %v426_v33 = vsub.f32 %v2297_v16, %v425_v24  ;;  %v446_v37 = vand.u32 4294901760, %v2321_v25  ;;  %p1173_p7 = scmp.lt.s32.totalorder (%p2196_p8), %s1172_s30, 7 }
  0x45   : > { %1585 = vmatprep.subr.mxu0 %v2134_v0  ;;  %v433_v41 = vsub.f32 %v2309_v20, %v432_v28  ;;  %v2363_v43 = vsub.f32 %v216_v17, %v2325_v27  ;;  %v2367_v44 = vsub.f32 %v215_v21, %v2335_v31  ;;  %v440_v47 = vsub.f32 %v2315_v22, %v439_v34 }
  0x46   : > { %1586 = vmatpush3.msra.mxu0 %v2284_v11  ;;  %v413_v39 = vand.u32 4294901760, %v412_v32  ;;  %v420_v40 = vand.u32 4294901760, %v419_v30  ;;  %v427_v46 = vand.u32 4294901760, %v426_v33  ;;  %v2374_v48 = vand.u32 4294901760, %v213_v38  ;;  %v208_v32 = vld [vmem:[%s2942_s1] sm:$0xff] }
  0x47   : > { %1587 = vmatprep.subr.mxu0 %v2134_v0  ;;  %v453_v49 = vand.u32 4294901760, %v2346_v35  ;;  %v447_v51 = vsub.f32 %v2321_v25, %v446_v37  ;;  %v2385_v52 = vand.u32 4294901760, %v212_v42  ;;  %v434_v53 = vand.u32 4294901760, %v433_v41 }
  0x48   : > { %1588 = vmatpush3.msra.mxu0 %v2286_v12  ;;  %1633 = vmatpush3.msra.mxu1 %v413_v39  ;;  %v460_v54 = vand.u32 4294901760, %v2363_v43  ;;  %v2390_v55 = vsub.f32 %v214_v29, %v2349_v36  ;;  %v233_v56 = vsel %vm231_vm2, %v201_v45, 0  ;;  %v2395_v57 = vand.u32 4294901760, %v211_v50 }
  0x49   : > { %1589 = vmatprep.subr.mxu0 %v2134_v0  ;;  %1634 = vmatprep.subr.mxu1 %v2134_v0  ;;  %v467_v58 = vand.u32 4294901760, %v2367_v44  ;;  %v441_v60 = vand.u32 4294901760, %v440_v47  ;;  %v454_v61 = vsub.f32 %v2346_v35, %v453_v49  ;;  %v2406_v62 = vsub.f32 %v213_v38, %v2374_v48 }
  0x4a   : > { %1590 = vmatpush3.msra.mxu0 %v2288_v13  ;;  %1635 = vmatpush3.msra.mxu1 %v420_v40  ;;  %v2408_v63 = vand.u32 4294901760, %v233_v56  ;;  %v448_v1 = vand.u32 4294901760, %v447_v51  ;;  %v461_v3 = vsub.f32 %v2363_v43, %v460_v54  ;;  %v2419_v4 = vand.u32 4294901760, %v210_v59 }
  0x4b   : > { %1591 = vmatprep.subr.mxu0 %v2134_v0  ;;  %1636 = vmatprep.subr.mxu1 %v2134_v0  ;;  %v2952_v7 = vand.u32 4294901760, %v2390_v55  ;;  %v2423_v8 = vsub.f32 %v212_v42, %v2385_v52  ;;  %v468_v14 = vsub.f32 %v2367_v44, %v467_v58  ;;  %v2432_v17 = vsub.f32 %v211_v50, %v2395_v57  ;;  %v203_v50 = vld [vmem:[%s2248_s9 + $0x10] sm:$0xff] }
  0x4c   : > { %1592 = vmatpush3.msra.mxu0 %v2306_v19  ;;  %1637 = vmatpush3.msra.mxu1 %v427_v46  ;;  %v455_v21 = vand.u32 4294901760, %v454_v61  ;;  %v2435_v29 = vand.u32 4294901760, %v209_v2  ;;  %v2949_v30 = vand.u32 4294901760, %v2406_v62  ;;  %v2442_v33 = vsub.f32 %v233_v56, %v2408_v63 }
  0x4d   : > { %1593 = vmatprep.subr.mxu0 %v2134_v0  ;;  %1638 = vmatprep.subr.mxu1 %v2134_v0  ;;  %v236_v38 = vsel %vm231_vm2, %v202_v9, 0  ;;  %v462_v39 = vand.u32 4294901760, %v461_v3  ;;  %v475_v40 = vsub.f32 %v2390_v55, %v2952_v7  ;;  %v2946_v41 = vand.u32 4294901760, %v2423_v8 }
  0x4e   : > { %1594 = vmatpush3.msra.mxu0 %v2325_v27  ;;  %1639 = vmatpush3.msra.mxu1 %v434_v53  ;;  %v2453_v42 = vsub.f32 %v210_v59, %v2419_v4  ;;  %v469_v45 = vand.u32 4294901760, %v468_v14  ;;  %v2457_v46 = vand.u32 4294901760, %v208_v32  ;;  %v2945_v47 = vand.u32 4294901760, %v2432_v17 }
  0x4f   : > { %1595 = vmatprep.subr.mxu0 %v2134_v0  ;;  %1640 = vmatprep.subr.mxu1 %v2134_v0  ;;  %v482_v51 = vsub.f32 %v2406_v62, %v2949_v30  ;;  %v340_v53 = vand.u32 4294901760, %v2442_v33  ;;  %v2467_v56 = vsub.f32 %v209_v2, %v2435_v29  ;;  %v2469_v59 = vand.u32 4294901760, %v236_v38 }
  0x50   : > { %1596 = vmatpush3.msra.mxu0 %v2335_v31  ;;  %1641 = vmatpush3.msra.mxu1 %v441_v60  ;;  %v476_v60 = vand.u32 4294901760, %v475_v40  ;;  %v489_v61 = vsub.f32 %v2423_v8, %v2946_v41  ;;  %v239_v2 = vsel %vm231_vm2, %v203_v50, 0  ;;  %v496_v3 = vsub.f32 %v2432_v17, %v2945_v47 }
  0x51   : > { %1597 = vmatprep.subr.mxu0 %v2134_v0  ;;  %1642 = vmatprep.subr.mxu1 %v2134_v0  ;;  %v2485_v9 = vsub.f32 %v208_v32, %v2457_v46  ;;  %v483_v14 = vand.u32 4294901760, %v482_v51  ;;  %v2493_v40 = vsub.f32 %v236_v38, %v2469_v59  ;;  %v2497_v50 = vand.u32 4294901760, %v239_v2  ;;  %v204_v32 = vld [vmem:[%s2248_s9 + $0x18] sm:$0xff] }
  0x52   : > { %1598 = vmatpush3.msra.mxu0 %v2349_v36  ;;  %1643 = vmatpush3.msra.mxu1 %v448_v1  ;;  %v2947_v1 = vand.u32 4294901760, %v2453_v42  ;;  %v497_v38 = vand.u32 4294901760, %v496_v3 }
  0x53   : > { %1599 = vmatprep.subr.mxu0 %v2134_v0  ;;  %1644 = vmatprep.subr.mxu1 %v2134_v0  ;;  %v2950_v47 = vand.u32 4294901760, %v2485_v9  ;;  %v2516_v3 = vsub.f32 %v239_v2, %v2497_v50 }
  0x54   : > { %1600 = vmatpush3.msra.mxu0 %v2374_v48  ;;  %1645 = vmatpush3.msra.mxu1 %v455_v21  ;;  %v341_v21 = vsub.f32 %v2442_v33, %v340_v53  ;;  %v503_v51 = vsub.f32 %v2453_v42, %v2947_v1  ;;  %v242_v1 = vsel %vm231_vm2, %v204_v32, 0 }
  0x55   : > { %1601 = vmatprep.subr.mxu0 %v2134_v0  ;;  %1646 = vmatprep.subr.mxu1 %v2134_v0  ;;  %v2524_v32 = vand.u32 4294901760, %v242_v1 }
  0x56   : > { %1602 = vmatpush3.msra.mxu0 %v2385_v52  ;;  %1647 = vmatpush3.msra.mxu1 %v462_v39  ;;  %v2948_v39 = vand.u32 4294901760, %v2467_v56  ;;  %v342_v41 = vand.u32 4294901760, %v341_v21  ;;  %v517_v21 = vsub.f32 %v2485_v9, %v2950_v47  ;;  %v206_v47 = vld [vmem:[%s2248_s9 + $0x28] sm:$0xff] }
  0x57   : > { %1603 = vmatprep.subr.mxu0 %v2134_v0  ;;  %1648 = vmatprep.subr.mxu1 %v2134_v0 }
  0x58   : > { %1604 = vmatpush3.msra.mxu0 %v2395_v57  ;;  %1649 = vmatpush3.msra.mxu1 %v469_v45  ;;  %v490_v45 = vand.u32 4294901760, %v489_v61  ;;  %v350_v61 = vand.u32 4294901760, %v2493_v40 }
  0x59   : > { %1605 = vmatprep.subr.mxu0 %v2134_v0  ;;  %1650 = vmatprep.subr.mxu1 %v2134_v0 }
  0x5a   : > { %1606 = vmatpush3.msra.mxu0 %v2419_v4  ;;  %1651 = vmatpush3.msra.mxu1 %v476_v60  ;;  %v510_v60 = vsub.f32 %v2467_v56, %v2948_v39  ;;  %v205_v39 = vld [vmem:[%s2248_s9 + $0x20] sm:$0xff]  ;;  %v351_v2 = vsub.f32 %v2493_v40, %v350_v61 }
  0x5b   : > { %1607 = vmatprep.subr.mxu0 %v2134_v0  ;;  %1652 = vmatprep.subr.mxu1 %v2134_v0 }
  0x5c   : > { %1608 = vmatpush3.msra.mxu0 %v2435_v29  ;;  %1653 = vmatpush3.msra.mxu1 %v483_v14  ;;  %v504_v14 = vand.u32 4294901760, %v503_v51  ;;  %v511_v30 = vand.u32 4294901760, %v510_v60  ;;  %v245_v51 = vsel %vm231_vm2, %v205_v39, 0  ;;  %v352_v60 = vand.u32 4294901760, %v351_v2 }
  0x5d   : > { %1609 = vmatprep.subr.mxu0 %v2134_v0  ;;  %1654 = vmatprep.subr.mxu1 %v2134_v0 }
  0x5e   : > { %1610 = vmatpush3.msra.mxu0 %v2457_v46  ;;  %1655 = vmatpush3.msra.mxu1 %v490_v45  ;;  %v360_v45 = vand.u32 4294901760, %v2516_v3 }
  0x5f   : > { %1656 = vmatprep.subr.mxu1 %v2134_v0  ;;  %1685 = vmatprep.subr.mxu0 %v2134_v0 }
  0x60   : > { %1612 = vmatmul.mubr.f32.vlgmr.msra.gmra.mxu0 %v342_v41  ;;  %1657 = vmatpush3.msra.mxu1 %v497_v38  ;;  %v518_v41 = vand.u32 4294901760, %v517_v21  ;;  %v2538_v38 = vsub.f32 %v242_v1, %v2524_v32  ;;  %v361_v39 = vsub.f32 %v2516_v3, %v360_v45  ;;  %v248_v1 = vsel %vm231_vm2, %v206_v47, 0 }
  0x61   : > { %1686 = vmatpush3.msra.mxu0 %v2304_v18  ;;  %1658 = vmatprep.subr.mxu1 %v2134_v0  ;;  %v2964_v18 = vand.u32 4294901760, %v2485_v9 }
  0x62   : > { %1687 = vmatprep.subr.mxu0 %v2134_v0  ;;  %1659 = vmatpush3.msra.mxu1 %v504_v14  ;;  %v2546_v14 = vand.u32 4294901760, %v245_v51  ;;  %v362_v21 = vand.u32 4294901760, %v361_v39 }
  0x63   : > { %1688 = vmatpush3.msra.mxu0 %v2294_v15  ;;  %1660 = vmatprep.subr.mxu1 %v2134_v0  ;;  %v2962_v15 = vand.u32 4294901760, %v2453_v42 }
  0x64   : > { %1689 = vmatprep.subr.mxu0 %v2134_v0  ;;  %1661 = vmatpush3.msra.mxu1 %v511_v30  ;;  %v2951_v30 = vand.u32 4294901760, %v2538_v38  ;;  %v2559_v2 = vsub.f32 %v245_v51, %v2546_v14 }
  0x65   : > { %1690 = vmatpush3.msra.mxu0 %v2297_v16  ;;  %1662 = vmatprep.subr.mxu1 %v2134_v0  ;;  %v2963_v16 = vand.u32 4294901760, %v2467_v56 }
  0x66   : > { %1691 = vmatprep.subr.mxu0 %v2134_v0  ;;  %1614 = vmatprep.mubr.msk.f32.mxu0 %vm2135_vm0, %v2134_v0  ;;  %v371_v47 = vsub.f32 %v2538_v38, %v2951_v30  ;;  %v2953_v51 = vand.u32 4294901760, %v2559_v2 }
  0x67   : > { %1663 = vmatpush3.msra.mxu1 %v518_v41  ;;  %1692 = vmatpush3.msra.mxu0 %v2309_v20  ;;  %v2568_v41 = vand.u32 4294901760, %v248_v1  ;;  %v1426_v20 = vld [vmem:[%s2943_s2] ss:$0 sm:$0xff] }
  0x68   : > { %1615 = vmatmul.mubr.f32.gmra.mxu0 %v352_v60  ;;  %1665 = vmatmul.mubr.f32.vlgmr.msra.gmra.mxu1 %v2408_v63  ;;  %v207_v60 = vld [vmem:[%s2248_s9 + $0x30] sm:$0xff]  ;;  %v372_v30 = vand.u32 4294901760, %v371_v47 }
  0x69   : > { %1693 = vmatprep.subr.mxu0 %v2134_v0  ;;  %1738 = vmatprep.subr.mxu1 %v2134_v0  ;;  %v251_v39 = vsel %vm231_vm2, %v207_v60, 0  ;;  %v2582_v7 = vsub.f32 %v248_v1, %v2568_v41 }
  0x6a   : > { %1694 = vmatpush3.msra.mxu0 %v2315_v22  ;;  %1739 = vmatpush3.msra.mxu1 %v2282_v10  ;;  %v2593_v60 = vand.u32 4294901760, %v251_v39 }
  0x6b   : > { %1695 = vmatprep.subr.mxu0 %v2134_v0  ;;  %1740 = vmatprep.subr.mxu1 %v2134_v0  ;;  %v390_v1 = vand.u32 4294901760, %v2582_v7 }
  0x6c   : > { %1617 = vmatprep.mubr.msk.f32.mxu0 %vm2135_vm0, %v2134_v0  ;;  %1696 = vmatpush3.msra.mxu0 %v2321_v25 }
  0x6d   : > { %1741 = vmatpush3.msra.mxu1 %v2269_v5  ;;  %1618 = vmatmul.mubr.f32.gmra.mxu0 %v362_v21  ;;  %v381_v21 = vsub.f32 %v2559_v2, %v2953_v51  ;;  %v2604_v51 = vsub.f32 %v251_v39, %v2593_v60 }
  0x6e   : > { %1697 = vmatprep.subr.mxu0 %v2134_v0  ;;  %1742 = vmatprep.subr.mxu1 %v2134_v0 }
  0x6f   : > { %1698 = vmatpush3.msra.mxu0 %v2346_v35  ;;  %1743 = vmatpush3.msra.mxu1 %v2271_v6  ;;  %v382_v47 = vand.u32 4294901760, %v381_v21  ;;  %v400_v39 = vand.u32 4294901760, %v2604_v51 }
  0x70   : > { %1667 = vmatprep.mubr.msk.f32.mxu1 %vm2135_vm0, %v2134_v0  ;;  %1699 = vmatprep.subr.mxu0 %v2134_v0 }
  0x71   : > { %1744 = vmatprep.subr.mxu1 %v2134_v0  ;;  %1620 = vmatprep.mubr.msk.f32.mxu0 %vm2135_vm0, %v2134_v0 }
  0x72   : > { %1668 = vmatmul.mubr.f32.gmra.mxu1 %v2469_v59  ;;  %1700 = vmatpush3.msra.mxu0 %v2363_v43 }
  0x73   : > { %1745 = vmatpush3.msra.mxu1 %v2284_v11  ;;  %1621 = vmatmul.mubr.f32.gmra.mxu0 %v372_v30  ;;  %v391_v30 = vsub.f32 %v2582_v7, %v390_v1 }
  0x74   : > { %1701 = vmatprep.subr.mxu0 %v2134_v0  ;;  %1746 = vmatprep.subr.mxu1 %v2134_v0 }
  0x75   : > { %1702 = vmatpush3.msra.mxu0 %v2367_v44  ;;  %1747 = vmatpush3.msra.mxu1 %v2286_v12  ;;  %v392_v21 = vand.u32 4294901760, %v391_v30 }
  0x76   : > { %1670 = vmatprep.mubr.msk.f32.mxu1 %vm2135_vm0, %v2134_v0  ;;  %1703 = vmatprep.subr.mxu0 %v2134_v0 }
  0x77   : > { %1748 = vmatprep.subr.mxu1 %v2134_v0  ;;  %1623 = vmatprep.mubr.msk.f32.mxu0 %vm2135_vm0, %v2134_v0 }
  0x78   : > { %1671 = vmatmul.mubr.f32.gmra.mxu1 %v2497_v50  ;;  %1704 = vmatpush3.msra.mxu0 %v2390_v55 }
  0x79   : > { %1749 = vmatpush3.msra.mxu1 %v2288_v13  ;;  %1624 = vmatmul.mubr.f32.gmra.mxu0 %v382_v47  ;;  %v401_v47 = vsub.f32 %v2604_v51, %v400_v39 }
  0x7a   : > { %1705 = vmatprep.subr.mxu0 %v2134_v0  ;;  %1750 = vmatprep.subr.mxu1 %v2134_v0 }
  0x7b   : > { %1706 = vmatpush3.msra.mxu0 %v2406_v62  ;;  %1751 = vmatpush3.msra.mxu1 %v2306_v19  ;;  %v402_v30 = vand.u32 4294901760, %v401_v47 }
  0x7c   : > { %1673 = vmatprep.mubr.msk.f32.mxu1 %vm2135_vm0, %v2134_v0  ;;  %1707 = vmatprep.subr.mxu0 %v2134_v0 }
  0x7d   : > { %1752 = vmatprep.subr.mxu1 %v2134_v0  ;;  %1626 = vmatprep.mubr.msk.f32.mxu0 %vm2135_vm0, %v2134_v0 }
  0x7e   : > { %1674 = vmatmul.mubr.f32.gmra.mxu1 %v2524_v32  ;;  %1708 = vmatpush3.msra.mxu0 %v2423_v8 }
  0x7f   : > { %1753 = vmatpush3.msra.mxu1 %v2325_v27  ;;  %1627 = vmatmul.mubr.f32.gmra.mxu0 %v392_v21 }
  0x80   : > { %1709 = vmatprep.subr.mxu0 %v2134_v0  ;;  %1754 = vmatprep.subr.mxu1 %v2134_v0 }
  0x81   : > { %1710 = vmatpush3.msra.mxu0 %v2432_v17  ;;  %1755 = vmatpush3.msra.mxu1 %v2335_v31 }
  0x82   : > { %1676 = vmatprep.mubr.msk.f32.mxu1 %vm2135_vm0, %v2134_v0  ;;  %1711 = vmatprep.subr.mxu0 %v2134_v0 }
  0x83   : > { %1756 = vmatprep.subr.mxu1 %v2134_v0  ;;  %1629 = vmatprep.mubr.msk.f32.mxu0 %vm2135_vm0, %v2134_v0 }
  0x84   : > { %1677 = vmatmul.mubr.f32.gmra.mxu1 %v2546_v14  ;;  %1712 = vmatpush3.msra.mxu0 %v2453_v42 }
  0x85   : > { %1757 = vmatpush3.msra.mxu1 %v2349_v36  ;;  %1630 = vmatmul.mubr.f32.gmra.mxu0 %v402_v30 }
  0x86   : > { %1713 = vmatprep.subr.mxu0 %v2134_v0  ;;  %1758 = vmatprep.subr.mxu1 %v2134_v0 }
  0x87   : > { %1714 = vmatpush3.msra.mxu0 %v2467_v56  ;;  %1759 = vmatpush3.msra.mxu1 %v2374_v48 }
  0x88   : > { %1679 = vmatprep.mubr.msk.f32.mxu1 %vm2135_vm0, %v2134_v0  ;;  %1715 = vmatprep.subr.mxu0 %v2134_v0 }
  0x89   : > { %1760 = vmatprep.subr.mxu1 %v2134_v0  ;;  %1680 = vmatmul.mubr.f32.gmra.mxu1 %v2568_v41 }
  0x8a   : > { %1716 = vmatpush3.msra.mxu0 %v2485_v9  ;;  %1717 = vmatprep.mubr.msk.f32.mxu0 %vm2135_vm0, %v2134_v0 }
  0x8b   : > { %1761 = vmatpush3.msra.mxu1 %v2385_v52  ;;  %1718 = vmatmul.mubr.f32.vlgmr.msra.gmra.mxu0 %v2442_v33 }
  0x8c   : > { %1762 = vmatprep.subr.mxu1 %v2134_v0  ;;  %1791 = vmatprep.subr.mxu0 %v2134_v0 }
  0x8d   : > { %1763 = vmatpush3.msra.mxu1 %v2395_v57  ;;  %1792 = vmatpush3.msra.mxu0 %v411_v26 }
  0x8e   : > { %1682 = vmatprep.mubr.msk.f32.mxu1 %vm2135_vm0, %v2134_v0  ;;  %1764 = vmatprep.subr.mxu1 %v2134_v0 }
  0x8f   : > { %1793 = vmatprep.subr.mxu0 %v2134_v0  ;;  %1683 = vmatmul.mubr.f32.gmra.mxu1 %v2593_v60 }
  0x90   : > { %1720 = vmatprep.mubr.msk.f32.mxu0 %vm2135_vm0, %v2134_v0  ;;  %1765 = vmatpush3.msra.mxu1 %v2419_v4 }
  0x91   : > { %1794 = vmatpush3.msra.mxu0 %v418_v23  ;;  %1766 = vmatprep.subr.mxu1 %v2134_v0 }
  0x92   : > { %1721 = vmatmul.mubr.f32.gmra.mxu0 %v2493_v40  ;;  %1795 = vmatprep.subr.mxu0 %v2134_v0 }
  0x93   : > { %1767 = vmatpush3.msra.mxu1 %v2435_v29  ;;  %1796 = vmatpush3.msra.mxu0 %v425_v24 }
  0x94   : > { %1768 = vmatprep.subr.mxu1 %v2134_v0  ;;  %1797 = vmatprep.subr.mxu0 %v2134_v0 }
  0x95   : > { %1723 = vmatprep.mubr.msk.f32.mxu0 %vm2135_vm0, %v2134_v0  ;;  %1769 = vmatpush3.msra.mxu1 %v2457_v46 }
  0x96   : > { %1770 = vmatprep.mubr.msk.f32.mxu1 %vm2135_vm0, %v2134_v0  ;;  %1798 = vmatpush3.msra.mxu0 %v432_v28 }
  0x97   : > { %1724 = vmatmul.mubr.f32.gmra.mxu0 %v2516_v3  ;;  %1771 = vmatmul.mubr.f32.vlgmr.msra.gmra.mxu1 %v340_v53 }
  0x98   : > { %1799 = vmatprep.subr.mxu0 %v2134_v0  ;;  %1844 = vmatprep.subr.mxu1 %v2134_v0 }
  0x99   : > { %1800 = vmatpush3.msra.mxu0 %v439_v34  ;;  %1845 = vmatpush3.msra.mxu1 %v2282_v10  ;;  %v2958_v10 = vand.u32 4294901760, %v2406_v62 }
  0x9a   : > { %1801 = vmatprep.subr.mxu0 %v2134_v0  ;;  %1846 = vmatprep.subr.mxu1 %v2134_v0 }
  0x9b   : > { %1726 = vmatprep.mubr.msk.f32.mxu0 %vm2135_vm0, %v2134_v0  ;;  %1773 = vmatprep.mubr.msk.f32.mxu1 %vm2135_vm0, %v2134_v0 }
  0x9c   : > { %1802 = vmatpush3.msra.mxu0 %v446_v37  ;;  %1847 = vmatpush3.msra.mxu1 %v2269_v5  ;;  %v2956_v5 = vand.u32 4294901760, %v2390_v55 }
  0x9d   : > { %1727 = vmatmul.mubr.f32.gmra.mxu0 %v2538_v38  ;;  %1774 = vmatmul.mubr.f32.gmra.mxu1 %v350_v61 }
  0x9e   : > { %1803 = vmatprep.subr.mxu0 %v2134_v0  ;;  %1848 = vmatprep.subr.mxu1 %v2134_v0 }
  0x9f   : > { %1804 = vmatpush3.msra.mxu0 %v453_v49  ;;  %1849 = vmatpush3.msra.mxu1 %v2271_v6  ;;  %v2957_v6 = vand.u32 4294901760, %v2538_v38 }
  0xa0   : > { %1805 = vmatprep.subr.mxu0 %v2134_v0  ;;  %1850 = vmatprep.subr.mxu1 %v2134_v0 }
  0xa1   : > { %1729 = vmatprep.mubr.msk.f32.mxu0 %vm2135_vm0, %v2134_v0  ;;  %1776 = vmatprep.mubr.msk.f32.mxu1 %vm2135_vm0, %v2134_v0 }
  0xa2   : > { %1806 = vmatpush3.msra.mxu0 %v460_v54  ;;  %1851 = vmatpush3.msra.mxu1 %v2284_v11  ;;  %v2959_v11 = vand.u32 4294901760, %v2423_v8 }
  0xa3   : > { %1730 = vmatmul.mubr.f32.gmra.mxu0 %v2559_v2  ;;  %1777 = vmatmul.mubr.f32.gmra.mxu1 %v360_v45 }
  0xa4   : > { %1807 = vmatprep.subr.mxu0 %v2134_v0  ;;  %1852 = vmatprep.subr.mxu1 %v2134_v0 }
  0xa5   : > { %1808 = vmatpush3.msra.mxu0 %v467_v58  ;;  %1853 = vmatpush3.msra.mxu1 %v2286_v12  ;;  %v2960_v12 = vand.u32 4294901760, %v2559_v2 }
  0xa6   : > { %1809 = vmatprep.subr.mxu0 %v2134_v0  ;;  %1854 = vmatprep.subr.mxu1 %v2134_v0 }
  0xa7   : > { %1732 = vmatprep.mubr.msk.f32.mxu0 %vm2135_vm0, %v2134_v0  ;;  %1779 = vmatprep.mubr.msk.f32.mxu1 %vm2135_vm0, %v2134_v0 }
  0xa8   : > { %1810 = vmatpush3.msra.mxu0 %v2956_v5  ;;  %1855 = vmatpush3.msra.mxu1 %v2288_v13  ;;  %v2961_v13 = vand.u32 4294901760, %v2432_v17 }
  0xa9   : > { %1733 = vmatmul.mubr.f32.gmra.mxu0 %v2582_v7  ;;  %1780 = vmatmul.mubr.f32.gmra.mxu1 %v2957_v6 }
  0xaa   : > { %1811 = vmatprep.subr.mxu0 %v2134_v0  ;;  %1856 = vmatprep.subr.mxu1 %v2134_v0 }
  0xab   : > { %1812 = vmatpush3.msra.mxu0 %v2958_v10  ;;  %1857 = vmatpush3.msra.mxu1 %v2306_v19 }
  0xac   : > { %1813 = vmatprep.subr.mxu0 %v2134_v0  ;;  %1858 = vmatprep.subr.mxu1 %v2134_v0 }
  0xad   : > { %1735 = vmatprep.mubr.msk.f32.mxu0 %vm2135_vm0, %v2134_v0  ;;  %1782 = vmatprep.mubr.msk.f32.mxu1 %vm2135_vm0, %v2134_v0 }
  0xae   : > { %1814 = vmatpush3.msra.mxu0 %v2959_v11  ;;  %1859 = vmatpush3.msra.mxu1 %v2325_v27 }
  0xaf   : > { %1736 = vmatmul.mubr.f32.gmra.mxu0 %v2604_v51  ;;  %1783 = vmatmul.mubr.f32.gmra.mxu1 %v2960_v12 }
  0xb0   : > { %1815 = vmatprep.subr.mxu0 %v2134_v0  ;;  %1860 = vmatprep.subr.mxu1 %v2134_v0 }
  0xb1   : > { %1816 = vmatpush3.msra.mxu0 %v2961_v13  ;;  %1861 = vmatpush3.msra.mxu1 %v2335_v31 }
  0xb2   : > { %1817 = vmatprep.subr.mxu0 %v2134_v0  ;;  %1862 = vmatprep.subr.mxu1 %v2134_v0 }
  0xb3   : > { %1785 = vmatprep.mubr.msk.f32.mxu1 %vm2135_vm0, %v2134_v0  ;;  %1818 = vmatpush3.msra.mxu0 %v2962_v15 }
  0xb4   : > { %1863 = vmatpush3.msra.mxu1 %v2349_v36  ;;  %1819 = vmatprep.subr.mxu0 %v2134_v0 }
  0xb5   : > { %1786 = vmatmul.mubr.f32.gmra.mxu1 %v390_v1  ;;  %1864 = vmatprep.subr.mxu1 %v2134_v0 }
  0xb6   : > { %1820 = vmatpush3.msra.mxu0 %v2963_v16  ;;  %1865 = vmatpush3.msra.mxu1 %v2374_v48 }
  0xb7   : > { %1821 = vmatprep.subr.mxu0 %v2134_v0  ;;  %1866 = vmatprep.subr.mxu1 %v2134_v0 }
  0xb8   : > { %1788 = vmatprep.mubr.msk.f32.mxu1 %vm2135_vm0, %v2134_v0  ;;  %1822 = vmatpush3.msra.mxu0 %v2964_v18 }
  0xb9   : > { %1823 = vmatprep.mubr.msk.f32.mxu0 %vm2135_vm0, %v2134_v0  ;;  %1867 = vmatpush3.msra.mxu1 %v2385_v52 }
  0xba   : > { %1789 = vmatmul.mubr.f32.gmra.mxu1 %v400_v39  ;;  %1824 = vmatmul.mubr.f32.vlgmr.msra.gmra.mxu0 %v2408_v63 }
  0xbb   : > { %1868 = vmatprep.subr.mxu1 %v2134_v0  ;;  %1826 = vmatprep.mubr.msk.f32.mxu0 %vm2135_vm0, %v2134_v0 }
  0xbc   : > { %1869 = vmatpush3.msra.mxu1 %v2395_v57  ;;  %1876 = vmatprep.mubr.msk.f32.mxu1 %vm2135_vm0, %v2134_v0 }
  0xbd   : > { %1870 = vmatprep.subr.mxu1 %v2134_v0 }
  0xbe   : > { %1871 = vmatpush3.msra.mxu1 %v2419_v4  ;;  %1827 = vmatmul.mubr.f32.gmra.mxu0 %v2469_v59 }
  0xbf   : > { %1872 = vmatprep.subr.mxu1 %v2134_v0  ;;  %1829 = vmatprep.mubr.msk.f32.mxu0 %vm2135_vm0, %v2134_v0 }
  0xc0   : > { %1873 = vmatpush3.msra.mxu1 %v2435_v29 }
  0xc1   : > { %1874 = vmatprep.subr.mxu1 %v2134_v0 }
  0xc2   : > { %1875 = vmatpush3.msra.mxu1 %v2457_v46  ;;  %1830 = vmatmul.mubr.f32.gmra.mxu0 %v2497_v50 }
  0xc3   : > { %1877 = vmatmul.mubr.f32.vlgmr.msra.gmra.mxu1 %v2408_v63  ;;  %1832 = vmatprep.mubr.msk.f32.mxu0 %vm2135_vm0, %v2134_v0 }
  0xc4   : > { %1879 = vmatprep.mubr.msk.f32.mxu1 %vm2135_vm0, %v2134_v0 }
  0xc6   : > { %1833 = vmatmul.mubr.f32.gmra.mxu0 %v2524_v32 }
  0xc7   : > { %1880 = vmatmul.mubr.f32.gmra.mxu1 %v2469_v59  ;;  %1835 = vmatprep.mubr.msk.f32.mxu0 %vm2135_vm0, %v2134_v0 }
  0xc8   : > { %1882 = vmatprep.mubr.msk.f32.mxu1 %vm2135_vm0, %v2134_v0 }
  0xca   : > { %1836 = vmatmul.mubr.f32.gmra.mxu0 %v2546_v14 }
  0xcb   : > { %1883 = vmatmul.mubr.f32.gmra.mxu1 %v2497_v50  ;;  %1838 = vmatprep.mubr.msk.f32.mxu0 %vm2135_vm0, %v2134_v0 }
  0xcc   : > { %1885 = vmatprep.mubr.msk.f32.mxu1 %vm2135_vm0, %v2134_v0 }
  0xce   : > { %1839 = vmatmul.mubr.f32.gmra.mxu0 %v2568_v41 }
  0xcf   : > { %1886 = vmatmul.mubr.f32.gmra.mxu1 %v2524_v32  ;;  %1841 = vmatprep.mubr.msk.f32.mxu0 %vm2135_vm0, %v2134_v0 }
  0xd0   : > { %1888 = vmatprep.mubr.msk.f32.mxu1 %vm2135_vm0, %v2134_v0 }
  0xd2   : > { %1842 = vmatmul.mubr.f32.gmra.mxu0 %v2593_v60 }
  0xd3   : > { %1889 = vmatmul.mubr.f32.gmra.mxu1 %v2546_v14 }
  0xd4   : > { %1891 = vmatprep.mubr.msk.f32.mxu1 %vm2135_vm0, %v2134_v0 }
  0xd7   : > { %1892 = vmatmul.mubr.f32.gmra.mxu1 %v2568_v41 }
  0xd8   : > { %1894 = vmatprep.mubr.msk.f32.mxu1 %vm2135_vm0, %v2134_v0 }
  0xdb   : > { %1895 = vmatmul.mubr.f32.gmra.mxu1 %v2593_v60 }
 0x120   : > { %v344_v19 = vpop.f32.mrf.mxu0 }
 0x121   : > { %v345_v23 = vadd.f32 %v1426_v20, %v344_v19 }
 0x122   : > { %v1613_v22 = vpop.f32.mrf.mxu0 }
 0x128   : > { %v354_v24 = vpop.f32.mrf.mxu0  ;;  %v555_v25 = vpop.f32.mrf.mxu1 }
 0x129   : > { %v2844_v26 = vadd.f32 %v555_v25, %v345_v23  ;;  %v355_v34 = vadd.f32 %v1426_v20, %v354_v24 }
 0x12a   : > { %v1616_v27 = vpop.f32.mrf.mxu0  ;;  %v1666_v28 = vpop.f32.mrf.mxu1 }
 0x12d   : > { %v364_v31 = vpop.f32.mrf.mxu0 }
 0x12e   : > { %v365_v44 = vadd.f32 %v1426_v20, %v364_v31 }
 0x12f   : > { %v1619_v35 = vpop.f32.mrf.mxu0 }
 0x132   : > { %v561_v36 = vpop.f32.mrf.mxu1 }
 0x133   : > { %v2846_v0 = vadd.f32 %v561_v36, %v355_v34  ;;  %v374_v37 = vpop.f32.mrf.mxu0 }
 0x134   : > { %v1669_v43 = vpop.f32.mrf.mxu1  ;;  %v375_v57 = vadd.f32 %v1426_v20, %v374_v37 }
 0x135   : > { %v1622_v48 = vpop.f32.mrf.mxu0 }
 0x138   : > { %v567_v49 = vpop.f32.mrf.mxu1 }
 0x139   : > { %v2848_v52 = vadd.f32 %v567_v49, %v365_v44  ;;  %v384_v54 = vpop.f32.mrf.mxu0 }
 0x13a   : > { %v1672_v55 = vpop.f32.mrf.mxu1  ;;  %v385_v8 = vadd.f32 %v1426_v20, %v384_v54 }
 0x13b   : > { %v1625_v58 = vpop.f32.mrf.mxu0 }
 0x13e   : > { %v573_v62 = vpop.f32.mrf.mxu1 }
 0x13f   : > { %v2850_v63 = vadd.f32 %v573_v62, %v375_v57  ;;  %v394_v4 = vpop.f32.mrf.mxu0 }
 0x140   : > { %v1675_v7 = vpop.f32.mrf.mxu1  ;;  %v395_v46 = vadd.f32 %v1426_v20, %v394_v4 }
 0x141   : > { %v1628_v17 = vpop.f32.mrf.mxu0 }
 0x144   : > { %v579_v29 = vpop.f32.mrf.mxu1 }
 0x145   : > { %v2852_v33 = vadd.f32 %v579_v29, %v385_v8  ;;  %v404_v42 = vpop.f32.mrf.mxu0 }
 0x146   : > { %v1678_v53 = vpop.f32.mrf.mxu1  ;;  %v405_v61 = vadd.f32 %v1426_v20, %v404_v42 }
 0x147   : > { %v1631_v56 = vpop.f32.mrf.mxu0 }
 0x149   : > { %v585_v59 = vpop.f32.mrf.mxu1 }
 0x14a   : > { %v2854_v9 = vadd.f32 %v585_v59, %v395_v46 }
 0x14b   : > { %v695_v40 = vpop.f32.mrf.mxu0  ;;  %v1681_v50 = vpop.f32.mrf.mxu1 }
 0x14c   : > { %v696_v34 = vadd.f32 %v695_v40, %v2844_v26 }
 0x14d   : > { %v1719_v3 = vpop.f32.mrf.mxu0 }
 0x14f   : > { %v591_v32 = vpop.f32.mrf.mxu1 }
 0x150   : > { %v2856_v45 = vadd.f32 %v591_v32, %v405_v61 }
 0x151   : > { %v1684_v38 = vpop.f32.mrf.mxu1 }
 0x152   : > { %v702_v14 = vpop.f32.mrf.mxu0 }
 0x153   : > { %v703_v43 = vadd.f32 %v702_v14, %v2846_v0 }
 0x154   : > { %v1722_v2 = vpop.f32.mrf.mxu0 }
 0x157   : > { %v709_v41 = vpop.f32.mrf.mxu0  ;;  %v826_v51 = vpop.f32.mrf.mxu1 }
 0x158   : > { %v827_v36 = vadd.f32 %v826_v51, %v696_v34  ;;  %v710_v62 = vadd.f32 %v709_v41, %v2848_v52 }
 0x159   : > { %v1725_v60 = vpop.f32.mrf.mxu0  ;;  %v1772_v1 = vpop.f32.mrf.mxu1 }
 0x15d   : > { %v716_v39 = vpop.f32.mrf.mxu0  ;;  %v834_v21 = vpop.f32.mrf.mxu1 }
 0x15e   : > { %v835_v54 = vadd.f32 %v834_v21, %v703_v43  ;;  %v717_v42 = vadd.f32 %v716_v39, %v2850_v63 }
 0x15f   : > { %v1728_v47 = vpop.f32.mrf.mxu0  ;;  %v1775_v30 = vpop.f32.mrf.mxu1 }
 0x163   : > { %v723_v5 = vpop.f32.mrf.mxu0  ;;  %v842_v6 = vpop.f32.mrf.mxu1 }
 0x164   : > { %v843_v0 = vadd.f32 %v842_v6, %v710_v62  ;;  %v724_v61 = vadd.f32 %v723_v5, %v2852_v33 }
 0x165   : > { %v1731_v10 = vpop.f32.mrf.mxu0  ;;  %v1778_v11 = vpop.f32.mrf.mxu1 }
 0x169   : > { %v730_v12 = vpop.f32.mrf.mxu0  ;;  %v850_v13 = vpop.f32.mrf.mxu1 }
 0x16a   : > { %v851_v56 = vadd.f32 %v850_v13, %v717_v42  ;;  %v731_v51 = vadd.f32 %v730_v12, %v2854_v9 }
 0x16b   : > { %v1734_v15 = vpop.f32.mrf.mxu0  ;;  %v1781_v16 = vpop.f32.mrf.mxu1 }
 0x16f   : > { %v737_v18 = vpop.f32.mrf.mxu0  ;;  %v858_v19 = vpop.f32.mrf.mxu1 }
 0x170   : > { %v859_v14 = vadd.f32 %v858_v19, %v724_v61  ;;  %v738_v5 = vadd.f32 %v737_v18, %v2856_v45 }
 0x171   : > { %v1784_v20 = vpop.f32.mrf.mxu1  ;;  %v1737_v22 = vpop.f32.mrf.mxu0 }
 0x175   : > { %v866_v23 = vpop.f32.mrf.mxu1 }
 0x176   : > { %v867_v21 = vadd.f32 %v866_v23, %v731_v51 }
 0x177   : > { %v1787_v24 = vpop.f32.mrf.mxu1 }
 0x17a   : > { %v874_v25 = vpop.f32.mrf.mxu1  ;;  %v993_v27 = vpop.f32.mrf.mxu0 }
 0x17b   : > { %v994_v44 = vadd.f32 %v993_v27, %v827_v36  ;;  %v875_v11 = vadd.f32 %v874_v25, %v738_v5 }
 0x17c   : > { %v1825_v28 = vpop.f32.mrf.mxu0  ;;  %v1790_v31 = vpop.f32.mrf.mxu1 }
 0x17e   : > { %v999_v35 = vpop.f32.mrf.mxu0 }
 0x17f   : > { %v1000_v4 = vadd.f32 %v999_v35, %v835_v54 }
 0x180   : > { %v1828_v37 = vpop.f32.mrf.mxu0 }
 0x182   : > { %v1005_v48 = vpop.f32.mrf.mxu0 }
 0x183   : > { %v1116_v49 = vpop.f32.mrf.mxu1  ;;  %v1006_v46 = vadd.f32 %v1005_v48, %v843_v0 }
 0x184   : > { %v1117_v55 = vadd.f32 %v1116_v49, %v994_v44  ;;  %v1831_v57 = vpop.f32.mrf.mxu0 }
 0x185   : > { %v1878_v58 = vpop.f32.mrf.mxu1 }
 0x186   : > { %1157 = vst.msk [vmem:[%s2862_s26] sm:$0xff] %vm1156_vm3, %v1117_v55  ;;  %v1011_v26 = vpop.f32.mrf.mxu0 }
 0x187   : > { %v1122_v7 = vpop.f32.mrf.mxu1  ;;  %v1012_v3 = vadd.f32 %v1011_v26, %v851_v56 }
 0x188   : > { %v1123_v8 = vadd.f32 %v1122_v7, %v1000_v4  ;;  %v1834_v17 = vpop.f32.mrf.mxu0 }
 0x189   : > { %v1881_v29 = vpop.f32.mrf.mxu1 }
 0x18a   : > { %1158 = vst.msk [vmem:[%s2862_s26 + $0x8] sm:$0xff] %vm1156_vm3, %v1123_v8  ;;  %v1017_v52 = vpop.f32.mrf.mxu0 }
 0x18b   : > { %v1128_v53 = vpop.f32.mrf.mxu1  ;;  %v1018_v60 = vadd.f32 %v1017_v52, %v859_v14 }
 0x18c   : > { %v1129_v59 = vadd.f32 %v1128_v53, %v1006_v46  ;;  %v1837_v40 = vpop.f32.mrf.mxu0 }
 0x18d   : > { %v1884_v50 = vpop.f32.mrf.mxu1 }
 0x18e   : > { %1159 = vst.msk [vmem:[%s2862_s26 + $0x10] sm:$0xff] %vm1156_vm3, %v1129_v59  ;;  %v1023_v32 = vpop.f32.mrf.mxu0 }
 0x18f   : > { %v1134_v38 = vpop.f32.mrf.mxu1  ;;  %v1024_v6 = vadd.f32 %v1023_v32, %v867_v21 }
 0x190   : > { %v1135_v63 = vadd.f32 %v1134_v38, %v1012_v3  ;;  %v1840_v2 = vpop.f32.mrf.mxu0 }
 0x191   : > { %v1887_v41 = vpop.f32.mrf.mxu1 }
 0x192   : > { %1160 = vst.msk [vmem:[%s2862_s26 + $0x18] sm:$0xff] %vm1156_vm3, %v1135_v63  ;;  %v1029_v1 = vpop.f32.mrf.mxu0 }
 0x193   : > { %v1140_v39 = vpop.f32.mrf.mxu1  ;;  %v1030_v12 = vadd.f32 %v1029_v1, %v875_v11 }
 0x194   : > { %v1141_v33 = vadd.f32 %v1140_v39, %v1018_v60  ;;  %v1843_v47 = vpop.f32.mrf.mxu0 }
 0x195   : > { %v1890_v30 = vpop.f32.mrf.mxu1 }
 0x196   : > { %1161 = vst.msk [vmem:[%s2862_s26 + $0x20] sm:$0xff] %vm1156_vm3, %v1141_v33 }
 0x197   : > { %v1146_v10 = vpop.f32.mrf.mxu1 }
 0x198   : > { %v1147_v13 = vadd.f32 %v1146_v10, %v1024_v6 }
 0x199   : > { %v1893_v9 = vpop.f32.mrf.mxu1 }
 0x19a   : > { %1162 = vst.msk [vmem:[%s2862_s26 + $0x28] sm:$0xff] %vm1156_vm3, %v1147_v13  ;;  %1170 = sbr.rel (!%p2196_p8) target bundleno = 468 (0x1d4), region = 40 }
 0x19b   : > { %v1152_v15 = vpop.f32.mrf.mxu1 }
 0x19c   : > { %v1153_v16 = vadd.f32 %v1152_v15, %v1030_v12 }
 0x19d   : > { %v1896_v19 = vpop.f32.mrf.mxu1 }
 0x19e   : > { %1163 = vst.msk [vmem:[%s2862_s26 + $0x30] sm:$0xff] %vm1156_vm3, %v1153_v16 }
 0x19f   : > { %s2975_s30 = smov (!%p1173_p7, %s1172_s30), 7 }
 0x1a0   : > { %s1427_s27 = sshll.u32 %s2975_s30, 7 }
 0x1a1   : > { %p1430_p11 = scmp.eq.s32.totalorder %s1427_s27, 0 }
 0x1a2   : > { %2001 = sdivrem.u32 (!%p1430_p11), %s2975_s30, 7 }
 0x1a3   : > { %1181 = sbr.rel (%p1430_p11) target bundleno = 468 (0x1d4), region = 44 }
 0x1ab   : > { %s2895_s22 = spop.drf %2001 }
 0x1ac   : > { %p1431_p8 = scmp.le.s32.totalorder %s2895_s22, 0 }
 0x1ad   : > { %s2965_s16 = smov (!%p1431_p8), %s2889_s15  ;;  %s2966_s29 = smov (!%p1431_p8), %s2862_s26 }
 0x1ae   : > { %1370 = sbr.rel (%p1431_p8) target bundleno = 443 (0x1bb), region = 126  ;;  %s2904_s21 = smov (!%p1431_p8), 0  }
 0x1af   : > { %s2906_s5 = smov (!%p1431_p8), 0  }
 0x1b3 LB: >> { %v1258_v45 = vld [vmem:[%s2105_s29] sm:$0xff]  ;;  %v1260_v18 = vld [vmem:[%s2105_s29 + $0x8] sm:$0xff]  ;;  %v1262_v20 = vld [vmem:[%s2105_s29 + $0x10] sm:$0xff]  ;;  %s1272_s8 = sadd.s32 1, %s2109_s21  ;;  %s1252_s5 = sadd.s32 1, %s2113_s5   ;;  %s2113_s5 = sphi %s2906_s5, %s1252_s5   ;;  %s2109_s21 = sphi %s2904_s21, %s2967_s21   ;;  %s2105_s29 = sphi %s2966_s29, %s1277_s29   ;;  %s2101_s16 = sphi %s2965_s16, %s1278_s16  }
 0x1b4   : >> { %1259 = vst [vmem:[%s2101_s16] sm:$0xff] %v1258_v45  ;;  %1261 = vst [vmem:[%s2101_s16 + $0x8] sm:$0xff] %v1260_v18  ;;  %v1264_v22 = vld [vmem:[%s2105_s29 + $0x18] sm:$0xff]  ;;  %v1266_v23 = vld [vmem:[%s2105_s29 + $0x20] sm:$0xff]  ;;  %p1273_p4 = scmp.ge.s32.totalorder %s1272_s8, %s2895_s22  ;;  %p1251_p5 = scmp.ge.s32.totalorder %s1252_s5, %s2895_s22 }
 0x1b5   : >> { %1263 = vst [vmem:[%s2101_s16 + $0x10] sm:$0xff] %v1262_v20  ;;  %v1268_v24 = vld [vmem:[%s2105_s29 + $0x28] sm:$0xff]  ;;  %1265 = vst [vmem:[%s2101_s16 + $0x18] sm:$0xff] %v1264_v22  ;;  %v1270_v25 = vld [vmem:[%s2105_s29 + $0x30] sm:$0xff] }
 0x1b6   : >> { %1267 = vst [vmem:[%s2101_s16 + $0x20] sm:$0xff] %v1266_v23  ;;  %1269 = vst [vmem:[%s2101_s16 + $0x28] sm:$0xff] %v1268_v24  ;;  %s2977_s8 = smov (%p1273_p4, %s1272_s8), 0  ;;  %1254 = sbr.rel (!%p1251_p5) target bundleno = 435 (0x1b3), region = 132 }
 0x1b7   : >> { %1271 = vst [vmem:[%s2101_s16 + $0x30] sm:$0xff] %v1270_v25  ;;  %s1275_s10 = smul.u32 56, %s2977_s8  ;;  %s2967_s21 = smov %s2977_s8 }
 0x1b9   : >> { %s1277_s29 = scalar_lea.vmem %s2862_s26, %s1275_s10 [#allocation4]   ;;  %s1278_s16 = scalar_lea.vmem %s2889_s15, %s1275_s10  }
 0x1bb PF: > { %2003 = sdivrem.u32 %s2975_s30, 7 }
 0x1bc   : > { %s1432_s11 = smul.u32 56, %s2895_s22 }
 0x1be   : > { %s1283_s12 = scalar_lea.vmem %s2862_s26, %s1432_s11 [#allocation4]   ;;  %s1285_s18 = scalar_lea.vmem %s2889_s15, %s1432_s11  }
 0x1c4   : > { %s2004_s19 = spop.drf %2003 }
 0x1c5   : > { %p1434_p6 = scmp.le.s32.totalorder %s2004_s19, 0 }
 0x1c6   : > { %s2115_s23 = smov (!%p1434_p6), %s1285_s18   ;;  %s2119_s24 = smov (!%p1434_p6), %s1283_s12  }
 0x1c7   : > { %1384 = sbr.rel (%p1434_p6) target bundleno = 468 (0x1d4), region = 137  ;;  %s2123_s9 = smov (!%p1434_p6), 0  }
 0x1c8   : > { %s2127_s25 = smov (!%p1434_p6), 0  }
 0x1cc LB: >> { %v1295_v27 = vld [vmem:[%s2121_s24] sm:$0xff]  ;;  %s1297_s6 = sadd.s32 1, %s2125_s9  ;;  %s1289_s25 = sadd.s32 1, %s2129_s25   ;;  %s2129_s25 = sphi %s2127_s25, %s1289_s25   ;;  %s2125_s9 = sphi %s2123_s9, %s2124_s9   ;;  %s2121_s24 = sphi %s2119_s24, %s1302_s24   ;;  %s2117_s23 = sphi %s2115_s23, %s1303_s23  }
 0x1cd   : >> { %1296 = vst [vmem:[%s2117_s23] sm:$0xff] %v1295_v27  ;;  %p1298_p9 = scmp.ge.s32.totalorder %s1297_s6, %s2004_s19  ;;  %p1288_p10 = scmp.ge.s32.totalorder %s1289_s25, %s2004_s19 }
 0x1cf   : >> { %s2979_s6 = smov (%p1298_p9, %s1297_s6), 0  ;;  %1291 = sbr.rel (!%p1288_p10) target bundleno = 460 (0x1cc), region = 143 }
 0x1d0   : >> { %s1435_s26 = sshll.u32 %s2979_s6, 3  ;;  %s2124_s9 = smov %s2979_s6  }
 0x1d1   : >> { %s1302_s24 = scalar_lea.vmem %s1283_s12, %s1435_s26 [#allocation4]   ;;  %s1303_s23 = scalar_lea.vmem %s1285_s18, %s1435_s26  }
 0x1d4 PF: > { %p13_p12 = scmp.ge.s32.totalorder %s2178_s17, 10   ;;  %s2968_s12 = smov %s2089_s13 }
 0x1d5   : > { %s2969_s13 = smov %s2093_s14  ;;  %s2970_s14 = smov %s2188_s20 }
 0x1d6   : > { %s2971_s15 = smov %s2178_s17  ;;  %15 = sbr.rel (!%p13_p12) target bundleno = 3 (0x3), region = 154 }
 0x1db   :  { %1319 = vsyncpa [#allocation3], 1 }
 0x1dc   :  { %1321 = vsyncpa [#allocation3 + $0x1], 1 }

</bundles_post_ra>
